<compile_context>
chip_gen: v6e
topology: v6e:2x2x1
jax: 0.10.0
libtpu: 0.0.40
codegen_flags: <defaults>
</compile_context>

<pallas_src>
import jax
import jax.numpy as jnp
from jax.experimental import pallas as pl
from jax.experimental.pallas import tpu as pltpu

HIDDEN = 128
IN_F = 4
OUT_F = 6
OUT_PAD = 8            # head padded only to 8 lanes (full minor dim of output)
LN_EPS = 1e-5


def _round_up(x, m):
    return (x + m - 1) // m * m


def _num_tensorcores():
    """Best-effort detection of TensorCores per chip (v7x=2, v5e/v6e=1)."""
    try:
        info = pltpu.get_tpu_info()
        for attr in ("num_cores", "tensorcore_count", "num_tensorcores",
                     "cores_per_chip", "core_count"):
            v = getattr(info, attr, None)
            if isinstance(v, int) and v > 0:
                return v
    except Exception:
        pass
    return 1


def _layernorm(h, gamma, beta):
    """Fused single-pass LayerNorm (f32): var = E[h^2] - mu^2.

    NOTE: single-pass variance is slightly less stable than PyTorch's two-pass
    form; with f32 post-ReLU activations and eps=1e-5 this is well within
    tolerance here.
    """
    inv_n = 1.0 / h.shape[-1]
    s1 = jnp.sum(h, axis=-1, keepdims=True)
    s2 = jnp.sum(h * h, axis=-1, keepdims=True)
    mu = s1 * inv_n
    var = s2 * inv_n - mu * mu
    return (h - mu) * jax.lax.rsqrt(var + LN_EPS) * gamma + beta


def _mlp_kernel(x_ref, w1_ref, w2_ref, w3_ref, vec_ref, o_ref):
    x = x_ref[...]                      # (tb, 4)  f32
    vec = vec_ref[...]                  # (8, 128) f32 fused per-layer vectors
    b1, g1, be1 = vec[0:1, :], vec[1:2, :], vec[2:3, :]
    b2, g2, be2 = vec[3:4, :], vec[4:5, :], vec[5:6, :]
    b3 = vec[6:7, :OUT_PAD]             # (1, 8)

    # ---- Linear(4 -> H) on the VPU: 4 broadcast FMAs, no MXU ----
    w1 = w1_ref[...]                    # (4, 128) f32
    h = b1 + x[:, 0:1] * w1[0:1, :]
    for k in range(1, IN_F):
        h = h + x[:, k:k + 1] * w1[k:k + 1, :]
    h = jnp.maximum(h, 0.0)
    h = _layernorm(h, g1, be1)

    # ---- Dropout(0.2): identity in eval mode ----

    # ---- Linear(H -> H) + ReLU (bf16 MXU operands, f32 accumulate) ----
    h = jnp.dot(h.astype(w2_ref.dtype), w2_ref[...],
                preferred_element_type=jnp.float32) + b2
    h = jnp.maximum(h, 0.0)
    h = _layernorm(h, g2, be2)

    # ---- Linear(H -> 8-padded head) + Sigmoid on just the narrow head ----
    y = jnp.dot(h.astype(w3_ref.dtype), w3_ref[...],
                preferred_element_type=jnp.float32) + b3
    o_ref[...] = jax.nn.sigmoid(y)      # (tb, 8) narrow store


def wormhole_forward(x, params, *, tb=None, bf16_matmul=True, num_cores=None):
    """x: (B, 4) float32.  Returns (B, 6) float32."""
    B = x.shape[0]
    if num_cores is None:
        num_cores = _num_tensorcores()

    if tb is None:
        Bp8 = _round_up(B, 8)
        if num_cores <= 1:
            # Single TensorCore: the grid is a sequential loop, so one big tile.
            tb = min(2048, Bp8)
        else:
            # Megacore (v7x): keep >= num_cores grid steps when the batch allows.
            tb = min(2048, _round_up(max(Bp8 // num_cores, 8), 8))
    tb = max(8, _round_up(tb, 8))
    Bp = _round_up(B, tb)

    xp = x if Bp == B else jnp.pad(x, ((0, Bp - B), (0, 0)))

    (w1, b1, g1, be1, w2, b2, g2, be2, w3, b3) = params

    # Pad the 6-wide head to 8 lanes (zero columns -> identical first 6 outputs).
    w3p = jnp.pad(w3, ((0, 0), (0, OUT_PAD - OUT_F)))

    # Fuse all (1, H) per-layer vectors into a single (8, H) array: one DMA.
    b3_row = jnp.zeros((1, HIDDEN), jnp.float32).at[:, :OUT_F].set(b3[:, :OUT_F])
    spare = jnp.zeros((1, HIDDEN), jnp.float32)
    vec = jnp.concatenate([b1, g1, be1, b2, g2, be2, b3_row, spare], axis=0)

    if bf16_matmul:
        # Narrow MXU operands; kernel casts activations to match and
        # accumulates in f32 (preferred_element_type).  Halves weight DMA bytes.
        w2 = w2.astype(jnp.bfloat16)
        w3p = w3p.astype(jnp.bfloat16)

    # Parameters are grid-invariant: full-array blocks at block index (0, 0).
    def full_spec(arr):
        return pl.BlockSpec(arr.shape, lambda i: (0, 0))

    grid = (Bp // tb,)
    out = pl.pallas_call(
        _mlp_kernel,
        out_shape=jax.ShapeDtypeStruct((Bp, OUT_PAD), jnp.float32),
        grid_spec=pltpu.PrefetchScalarGridSpec(
            num_scalar_prefetch=0,
            grid=grid,
            in_specs=[
                pl.BlockSpec((tb, IN_F), lambda i: (i, 0)),   # x tile
                full_spec(w1),
                full_spec(w2),
                full_spec(w3p),
                full_spec(vec),
            ],
            out_specs=pl.BlockSpec((tb, OUT_PAD), lambda i: (i, 0)),
        ),
        compiler_params=pltpu.CompilerParams(
            dimension_semantics=("parallel",),
            vmem_limit_bytes=32 * 1024 * 1024,
        ),
    )(xp, w1, w2, w3p, vec)

    return out[:B, :OUT_F]


def init_params(key):
    """Deterministic parameter init (PyTorch-style uniform ranges)."""
    ks = jax.random.split(key, 6)

    def linear(kw, kb, fan_in, fan_out):
        bound = 1.0 / jnp.sqrt(fan_in)
        w = jax.random.uniform(kw, (fan_in, fan_out), jnp.float32, -bound, bound)
        b = jax.random.uniform(kb, (1, fan_out), jnp.float32, -bound, bound)
        return w, b

    w1, b1 = linear(ks[0], ks[1], IN_F, HIDDEN)
    w2, b2 = linear(ks[2], ks[3], HIDDEN, HIDDEN)
    w3, b3 = linear(ks[4], ks[5], HIDDEN, OUT_F)
    # LayerNorm affine params: PyTorch default init (gamma=1, beta=0).
    g1 = jnp.ones((1, HIDDEN), jnp.float32)
    be1 = jnp.zeros((1, HIDDEN), jnp.float32)
    g2 = jnp.ones((1, HIDDEN), jnp.float32)
    be2 = jnp.zeros((1, HIDDEN), jnp.float32)
    return (w1, b1, g1, be1, w2, b2, g2, be2, w3, b3)


def reference_forward(x, params, *, bf16_matmul=False):
    """Pure-JAX reference.  bf16_matmul=True mirrors the kernel's MXU precision."""
    (w1, b1, g1, be1, w2, b2, g2, be2, w3, b3) = params

    def mm(a, w):
        if bf16_matmul:
            return jnp.dot(a.astype(jnp.bfloat16), w.astype(jnp.bfloat16),
                           preferred_element_type=jnp.float32)
        return jnp.dot(a, w, preferred_element_type=jnp.float32)

    h = _layernorm(jnp.maximum(
        jnp.dot(x, w1, preferred_element_type=jnp.float32) + b1, 0.0), g1, be1)
    h = _layernorm(jnp.maximum(mm(h, w2) + b2, 0.0), g2, be2)
    return jax.nn.sigmoid(mm(h, w3) + b3)


if __name__ == "__main__":
    key = jax.random.PRNGKey(0)
    kp, kx = jax.random.split(key)
    params = init_params(kp)

    B = 32  # batch of wormhole parameter samples, each with 4 features
    x = jax.random.normal(kx, (B, IN_F), jnp.float32)

    # Default path: bf16 MXU operands for the 128-contractions, f32 accumulation.
    out = wormhole_forward(x, params)
    out = jax.block_until_ready(out)
    assert out.shape == (B, OUT_F)

    # Tight check against a reference with matching matmul precision.
    ref_bf16 = reference_forward(x, params, bf16_matmul=True)
    assert jnp.allclose(out, ref_bf16, atol=1e-4, rtol=1e-4), "mismatch vs bf16 reference"

    # Loose check against the pure-f32 (PyTorch-equivalent) forward: bf16 MXU
    # operands only introduce ~1e-3 level deviations.
    ref_f32 = reference_forward(x, params, bf16_matmul=False)
    assert jnp.allclose(out, ref_f32, atol=5e-2, rtol=0.0), "semantics drift vs f32 reference"

    # f32 path of the same kernel matches the f32 reference tightly.
    out_f32 = jax.block_until_ready(wormhole_forward(x, params, bf16_matmul=False))
    assert jnp.allclose(out_f32, ref_f32, atol=1e-5, rtol=1e-5), "mismatch vs f32 reference"

    # Exercise a multi-step grid (forced small tile) to cover the tiled path.
    out_tiled = jax.block_until_ready(wormhole_forward(x, params, tb=8))
    assert jnp.allclose(out_tiled, ref_bf16, atol=1e-4, rtol=1e-4), "tiled-path mismatch"

    print("KERNEL_OK")
</pallas_src>

<mosaic_0001>
module attributes {stable_mosaic.version = 11 : i64} {
  func.func @_mlp_kernel(%arg0: i32, %arg1: memref<32x4xf32, #tpu.memory_space<vmem>>, %arg2: memref<4x128xf32, #tpu.memory_space<vmem>>, %arg3: memref<128x128xbf16, #tpu.memory_space<vmem>>, %arg4: memref<128x8xbf16, #tpu.memory_space<vmem>>, %arg5: memref<8x128xf32, #tpu.memory_space<vmem>>, %arg6: memref<32x8xf32, #tpu.memory_space<vmem>>) attributes {dimension_semantics = [#tpu.dimension_semantics<parallel>], iteration_bounds = array<i64: 1>, scalar_prefetch = 0 : i64, scratch_operands = 0 : i64, tpu.core_type = #tpu.core_type<tc>, window_params = [{transform_indices = @transform_0, window_bounds = array<i64: 32, 4>}, {pipeline_mode = #tpu.pipeline_mode<synchronous>, transform_indices = @transform_1, window_bounds = array<i64: 4, 128>}, {pipeline_mode = #tpu.pipeline_mode<synchronous>, transform_indices = @transform_2, window_bounds = array<i64: 128, 128>}, {pipeline_mode = #tpu.pipeline_mode<synchronous>, transform_indices = @transform_3, window_bounds = array<i64: 128, 8>}, {pipeline_mode = #tpu.pipeline_mode<synchronous>, transform_indices = @transform_4, window_bounds = array<i64: 8, 128>}, {transform_indices = @transform_5, window_bounds = array<i64: 32, 8>}]} {
    %c0 = arith.constant 0 : index
    %c0_0 = arith.constant 0 : index
    %0 = vector.load %arg1[%c0, %c0_0] : memref<32x4xf32, #tpu.memory_space<vmem>>, vector<32x4xf32>
    %c0_1 = arith.constant 0 : index
    %c0_2 = arith.constant 0 : index
    %1 = vector.load %arg5[%c0_1, %c0_2] : memref<8x128xf32, #tpu.memory_space<vmem>>, vector<8x128xf32>
    %2 = vector.extract_strided_slice %1 {offsets = [0, 0], sizes = [1, 128], strides = [1, 1]} : vector<8x128xf32> to vector<1x128xf32>
    %3 = vector.extract_strided_slice %1 {offsets = [1, 0], sizes = [1, 128], strides = [1, 1]} : vector<8x128xf32> to vector<1x128xf32>
    %4 = vector.extract_strided_slice %1 {offsets = [2, 0], sizes = [1, 128], strides = [1, 1]} : vector<8x128xf32> to vector<1x128xf32>
    %5 = vector.extract_strided_slice %1 {offsets = [3, 0], sizes = [1, 128], strides = [1, 1]} : vector<8x128xf32> to vector<1x128xf32>
    %6 = vector.extract_strided_slice %1 {offsets = [4, 0], sizes = [1, 128], strides = [1, 1]} : vector<8x128xf32> to vector<1x128xf32>
    %7 = vector.extract_strided_slice %1 {offsets = [5, 0], sizes = [1, 128], strides = [1, 1]} : vector<8x128xf32> to vector<1x128xf32>
    %8 = vector.extract_strided_slice %1 {offsets = [6, 0], sizes = [1, 8], strides = [1, 1]} : vector<8x128xf32> to vector<1x8xf32>
    %c0_3 = arith.constant 0 : index
    %c0_4 = arith.constant 0 : index
    %9 = vector.load %arg2[%c0_3, %c0_4] : memref<4x128xf32, #tpu.memory_space<vmem>>, vector<4x128xf32>
    %10 = vector.extract_strided_slice %0 {offsets = [0, 0], sizes = [32, 1], strides = [1, 1]} : vector<32x4xf32> to vector<32x1xf32>
    %11 = vector.extract_strided_slice %9 {offsets = [0, 0], sizes = [1, 128], strides = [1, 1]} : vector<4x128xf32> to vector<1x128xf32>
    %12 = vector.broadcast %10 : vector<32x1xf32> to vector<32x128xf32>
    %13 = vector.broadcast %11 : vector<1x128xf32> to vector<32x128xf32>
    %14 = arith.mulf %12, %13 : vector<32x128xf32>
    %15 = vector.broadcast %2 : vector<1x128xf32> to vector<32x128xf32>
    %16 = arith.addf %15, %14 : vector<32x128xf32>
    %17 = vector.extract_strided_slice %0 {offsets = [0, 1], sizes = [32, 1], strides = [1, 1]} : vector<32x4xf32> to vector<32x1xf32>
    %18 = vector.extract_strided_slice %9 {offsets = [1, 0], sizes = [1, 128], strides = [1, 1]} : vector<4x128xf32> to vector<1x128xf32>
    %19 = vector.broadcast %17 : vector<32x1xf32> to vector<32x128xf32>
    %20 = vector.broadcast %18 : vector<1x128xf32> to vector<32x128xf32>
    %21 = arith.mulf %19, %20 : vector<32x128xf32>
    %22 = arith.addf %16, %21 : vector<32x128xf32>
    %23 = vector.extract_strided_slice %0 {offsets = [0, 2], sizes = [32, 1], strides = [1, 1]} : vector<32x4xf32> to vector<32x1xf32>
    %24 = vector.extract_strided_slice %9 {offsets = [2, 0], sizes = [1, 128], strides = [1, 1]} : vector<4x128xf32> to vector<1x128xf32>
    %25 = vector.broadcast %23 : vector<32x1xf32> to vector<32x128xf32>
    %26 = vector.broadcast %24 : vector<1x128xf32> to vector<32x128xf32>
    %27 = arith.mulf %25, %26 : vector<32x128xf32>
    %28 = arith.addf %22, %27 : vector<32x128xf32>
    %29 = vector.extract_strided_slice %0 {offsets = [0, 3], sizes = [32, 1], strides = [1, 1]} : vector<32x4xf32> to vector<32x1xf32>
    %30 = vector.extract_strided_slice %9 {offsets = [3, 0], sizes = [1, 128], strides = [1, 1]} : vector<4x128xf32> to vector<1x128xf32>
    %31 = vector.broadcast %29 : vector<32x1xf32> to vector<32x128xf32>
    %32 = vector.broadcast %30 : vector<1x128xf32> to vector<32x128xf32>
    %33 = arith.mulf %31, %32 : vector<32x128xf32>
    %34 = arith.addf %28, %33 : vector<32x128xf32>
    %cst = arith.constant 0.000000e+00 : f32
    %35 = vector.broadcast %cst : f32 to vector<32x128xf32>
    %36 = arith.maximumf %34, %35 : vector<32x128xf32>
    %cst_5 = arith.constant dense<0.000000e+00> : vector<32xf32>
    %37 = vector.multi_reduction <add>, %36, %cst_5 [1] : vector<32x128xf32> to vector<32xf32>
    %38 = vector.shape_cast %37 : vector<32xf32> to vector<32x1xf32>
    %39 = arith.mulf %36, %36 : vector<32x128xf32>
    %cst_6 = arith.constant dense<0.000000e+00> : vector<32xf32>
    %40 = vector.multi_reduction <add>, %39, %cst_6 [1] : vector<32x128xf32> to vector<32xf32>
    %41 = vector.shape_cast %40 : vector<32xf32> to vector<32x1xf32>
    %cst_7 = arith.constant 7.812500e-03 : f32
    %42 = vector.broadcast %cst_7 : f32 to vector<32x1xf32>
    %43 = arith.mulf %38, %42 : vector<32x1xf32>
    %cst_8 = arith.constant 7.812500e-03 : f32
    %44 = vector.broadcast %cst_8 : f32 to vector<32x1xf32>
    %45 = arith.mulf %41, %44 : vector<32x1xf32>
    %46 = arith.mulf %43, %43 : vector<32x1xf32>
    %47 = arith.subf %45, %46 : vector<32x1xf32>
    %48 = vector.broadcast %43 : vector<32x1xf32> to vector<32x128xf32>
    %49 = arith.subf %36, %48 : vector<32x128xf32>
    %cst_9 = arith.constant 9.99999974E-6 : f32
    %50 = vector.broadcast %cst_9 : f32 to vector<32x1xf32>
    %51 = arith.addf %47, %50 : vector<32x1xf32>
    %52 = math.rsqrt %51 : vector<32x1xf32>
    %53 = vector.broadcast %52 : vector<32x1xf32> to vector<32x128xf32>
    %54 = arith.mulf %49, %53 : vector<32x128xf32>
    %55 = vector.broadcast %3 : vector<1x128xf32> to vector<32x128xf32>
    %56 = arith.mulf %54, %55 : vector<32x128xf32>
    %57 = vector.broadcast %4 : vector<1x128xf32> to vector<32x128xf32>
    %58 = arith.addf %56, %57 : vector<32x128xf32>
    %59 = arith.truncf %58 : vector<32x128xf32> to vector<32x128xbf16>
    %c0_10 = arith.constant 0 : index
    %c0_11 = arith.constant 0 : index
    %60 = vector.load %arg3[%c0_10, %c0_11] : memref<128x128xbf16, #tpu.memory_space<vmem>>, vector<128x128xbf16>
    %cst_12 = arith.constant dense<0.000000e+00> : vector<32x128xf32>
    %61 = tpu.matmul %59, %60, %cst_12 {dimension_numbers = #tpu.dot_dimension_numbers<[1], [0], [0], [1], [0, 0, 1, 1], [], []>} : vector<32x128xbf16>, vector<128x128xbf16>, vector<32x128xf32> -> vector<32x128xf32>
    %62 = vector.broadcast %5 : vector<1x128xf32> to vector<32x128xf32>
    %63 = arith.addf %61, %62 : vector<32x128xf32>
    %cst_13 = arith.constant 0.000000e+00 : f32
    %64 = vector.broadcast %cst_13 : f32 to vector<32x128xf32>
    %65 = arith.maximumf %63, %64 : vector<32x128xf32>
    %cst_14 = arith.constant dense<0.000000e+00> : vector<32xf32>
    %66 = vector.multi_reduction <add>, %65, %cst_14 [1] : vector<32x128xf32> to vector<32xf32>
    %67 = vector.shape_cast %66 : vector<32xf32> to vector<32x1xf32>
    %68 = arith.mulf %65, %65 : vector<32x128xf32>
    %cst_15 = arith.constant dense<0.000000e+00> : vector<32xf32>
    %69 = vector.multi_reduction <add>, %68, %cst_15 [1] : vector<32x128xf32> to vector<32xf32>
    %70 = vector.shape_cast %69 : vector<32xf32> to vector<32x1xf32>
    %cst_16 = arith.constant 7.812500e-03 : f32
    %71 = vector.broadcast %cst_16 : f32 to vector<32x1xf32>
    %72 = arith.mulf %67, %71 : vector<32x1xf32>
    %cst_17 = arith.constant 7.812500e-03 : f32
    %73 = vector.broadcast %cst_17 : f32 to vector<32x1xf32>
    %74 = arith.mulf %70, %73 : vector<32x1xf32>
    %75 = arith.mulf %72, %72 : vector<32x1xf32>
    %76 = arith.subf %74, %75 : vector<32x1xf32>
    %77 = vector.broadcast %72 : vector<32x1xf32> to vector<32x128xf32>
    %78 = arith.subf %65, %77 : vector<32x128xf32>
    %cst_18 = arith.constant 9.99999974E-6 : f32
    %79 = vector.broadcast %cst_18 : f32 to vector<32x1xf32>
    %80 = arith.addf %76, %79 : vector<32x1xf32>
    %81 = math.rsqrt %80 : vector<32x1xf32>
    %82 = vector.broadcast %81 : vector<32x1xf32> to vector<32x128xf32>
    %83 = arith.mulf %78, %82 : vector<32x128xf32>
    %84 = vector.broadcast %6 : vector<1x128xf32> to vector<32x128xf32>
    %85 = arith.mulf %83, %84 : vector<32x128xf32>
    %86 = vector.broadcast %7 : vector<1x128xf32> to vector<32x128xf32>
    %87 = arith.addf %85, %86 : vector<32x128xf32>
    %88 = arith.truncf %87 : vector<32x128xf32> to vector<32x128xbf16>
    %c0_19 = arith.constant 0 : index
    %c0_20 = arith.constant 0 : index
    %89 = vector.load %arg4[%c0_19, %c0_20] : memref<128x8xbf16, #tpu.memory_space<vmem>>, vector<128x8xbf16>
    %cst_21 = arith.constant dense<0.000000e+00> : vector<32x8xf32>
    %90 = tpu.matmul %88, %89, %cst_21 {dimension_numbers = #tpu.dot_dimension_numbers<[1], [0], [0], [1], [0, 0, 1, 1], [], []>} : vector<32x128xbf16>, vector<128x8xbf16>, vector<32x8xf32> -> vector<32x8xf32>
    %91 = vector.broadcast %8 : vector<1x8xf32> to vector<32x8xf32>
    %92 = arith.addf %90, %91 : vector<32x8xf32>
    %93 = arith.negf %92 : vector<32x8xf32>
    %94 = math.exp %93 : vector<32x8xf32>
    %cst_22 = arith.constant 1.000000e+00 : f32
    %95 = vector.broadcast %cst_22 : f32 to vector<32x8xf32>
    %96 = arith.addf %95, %94 : vector<32x8xf32>
    %97 = arith.divf %95, %96 : vector<32x8xf32>
    %c0_23 = arith.constant 0 : index
    %c0_24 = arith.constant 0 : index
    %98 = vector.load %arg6[%c0_23, %c0_24] : memref<32x8xf32, #tpu.memory_space<vmem>>, vector<32x8xf32>
    tpu.vector_store %arg6[%c0_23, %c0_24], %97 {strides = array<i32>} : memref<32x8xf32, #tpu.memory_space<vmem>>, vector<32x8xf32>,
    return
  }
  func.func @transform_0(%arg0: i32) -> (i32, i32) {
    %c0_i32 = arith.constant 0 : i32
    %c0_i32_0 = arith.constant 0 : i32
    return %arg0, %c0_i32 : i32, i32
  }
  func.func @transform_1(%arg0: i32) -> (i32, i32) {
    %c0_i32 = arith.constant 0 : i32
    %c0_i32_0 = arith.constant 0 : i32
    %c0_i32_1 = arith.constant 0 : i32
    return %c0_i32, %c0_i32_0 : i32, i32
  }
  func.func @transform_2(%arg0: i32) -> (i32, i32) {
    %c0_i32 = arith.constant 0 : i32
    %c0_i32_0 = arith.constant 0 : i32
    %c0_i32_1 = arith.constant 0 : i32
    return %c0_i32, %c0_i32_0 : i32, i32
  }
  func.func @transform_3(%arg0: i32) -> (i32, i32) {
    %c0_i32 = arith.constant 0 : i32
    %c0_i32_0 = arith.constant 0 : i32
    %c0_i32_1 = arith.constant 0 : i32
    return %c0_i32, %c0_i32_0 : i32, i32
  }
  func.func @transform_4(%arg0: i32) -> (i32, i32) {
    %c0_i32 = arith.constant 0 : i32
    %c0_i32_0 = arith.constant 0 : i32
    %c0_i32_1 = arith.constant 0 : i32
    return %c0_i32, %c0_i32_0 : i32, i32
  }
  func.func @transform_5(%arg0: i32) -> (i32, i32) {
    %c0_i32 = arith.constant 0 : i32
    %c0_i32_0 = arith.constant 0 : i32
    return %arg0, %c0_i32 : i32, i32
  }
}

</mosaic_0001>

<bundles_post_ra>
// kernel: tpu_custom_call.1
= control target key start
LH: loop header
LB: loop body
LE: loop exit
PB: predicated region body
PF: predicated region fallthrough
CT: control target
= control target key end

     0   :  { %v702_v0 = vmov 0   ;;  %v703_v5 = vmov 1   ;;  %v704_v6 = vmov 2   ;;  %v705_v7 = vmov 3   ;;  %s892_s0 = inlined_call_operand.vmem [shape: f32[32,4], index: 0, kind: input, shape index: {}]   ;;  %s893_s1 = inlined_call_operand.vmem [shape: f32[4,128], index: 1, kind: input, shape index: {}]   ;;  %s894_s4 = inlined_call_operand.vmem [shape: f32[8,128], index: 4, kind: input, shape index: {}]   ;;  %s895_s2 = inlined_call_operand.vmem [shape: bf16[128,128], index: 2, kind: input, shape index: {}]   ;;  %s896_s3 = inlined_call_operand.vmem [shape: bf16[128,8], index: 3, kind: input, shape index: {}]   ;;  %s897_s5 = inlined_call_operand.vmem [shape: f32[32,8], index: 5, kind: output, shape index: {}]  }
   0x1   :  { %647 = vset.pattern.permute.xlu1 %v702_v0  ;;  %646 = vset.pattern.permute.xlu0 %v702_v0  ;;  %v23_v1 = vld [vmem:[%s892_s0 + $0x10] sm:$0xff]  ;;  %v21_v2 = vld [vmem:[%s892_s0] sm:$0xff]  ;;  %v24_v3 = vld [vmem:[%s892_s0 + $0x18] sm:$0xff]  ;;  %v47_v8 = vlaneseq  ;;  %vm553_vm0 = vcmask 64512  }
   0x2   :  { %39 = vperm.xlu1 %647, %v23_v1   ;;  %29 = vperm.xlu0 %646, %v21_v2   ;;  %v22_v4 = vld [vmem:[%s892_s0 + $0x8] sm:$0xff]  ;;  %v26_v15 = vld [vmem:[%s893_s1] sm:$0xf] }
   0x3   :  { %v748_v11 = vshrl.u32 %v47_v8, 7  ;;  %v759_v21 = vld [vmem:[%s894_s4] sm:$0xff] }
   0x5   :  { %v49_v14 = vsub.s32 0, %v748_v11  ;;  %v81_v18 = vsub.s32 1, %v748_v11  ;;  %v109_v20 = vsub.s32 2, %v748_v11  ;;  %v137_v28 = vsub.s32 3, %v748_v11 }
   0x6   :  { %44 = vperm.xlu1 %647, %v24_v3   ;;  %34 = vperm.xlu0 %646, %v22_v4  }
   0x7   :  { %v50_v19 = vrot.slane %v26_v15, %v49_v14  ;;  %v82_v25 = vrot.slane %v26_v15, %v81_v18  ;;  %v58_v26 = vrot.slane %v759_v21, %v49_v14  ;;  %v110_v27 = vrot.slane %v26_v15, %v109_v20  ;;  %v654_v14 = vld [vmem:[%s895_s2 + $0x38] sm:$0xff]  }
   0x8   :  { %v138_v34 = vrot.slane %v26_v15, %v137_v28  ;;  %602 = vmatprep.subr.bf16.mxu0 %v654_v14  ;;  %v655_v15 = vld [vmem:[%s895_s2 + $0x30] sm:$0xff]  }
   0x9   :  { %603 = vmatpush3.bf16.msra.mxu0 %v654_v14 }
   0xa   :  { %649 = vset.pattern.permute.xlu1 %v703_v5  ;;  %648 = vset.pattern.permute.xlu0 %v703_v5 }
   0xb   :  { %68 = vperm.xlu1 %649, %v22_v4   ;;  %64 = vperm.xlu0 %648, %v21_v2  }
   0xc   :  { %604 = vmatprep.subr.bf16.mxu0 %v655_v15 }
   0xd   :  { %605 = vmatpush3.bf16.msra.mxu0 %v655_v15 }
   0xf   :  { %72 = vperm.xlu1 %649, %v23_v1   ;;  %76 = vperm.xlu0 %648, %v24_v3  }
  0x13   :  { %650 = vset.pattern.permute.xlu1 %v704_v6  ;;  %651 = vset.pattern.permute.xlu0 %v704_v6 }
  0x14   :  { %92 = vperm.xlu1 %650, %v21_v2   ;;  %96 = vperm.xlu0 %651, %v22_v4  }
  0x18   :  { %100 = vperm.xlu1 %650, %v23_v1   ;;  %652 = vset.pattern.permute.xlu0 %v705_v7 }
  0x19   :  { %120 = vperm.xlu0 %652, %v21_v2  }
  0x1c   :  { %104 = vperm.xlu1 %650, %v24_v3  }
  0x1d   :  { %132 = vperm.xlu0 %652, %v24_v3  }
  0x20   :  { %653 = vset.pattern.permute.xlu1 %v705_v7 }
  0x21   :  { %124 = vperm.xlu1 %653, %v22_v4  }
  0x25   :  { %128 = vperm.xlu1 %653, %v23_v1  }
  0x7d   :  { %v40_v9 = vpop.permute.xlu1 %39  ;;  %v30_v10 = vpop.permute.xlu0 %29 }
  0x7e   :  { %v51_v24 = vmul.f32 %v50_v19, %v30_v10  ;;  %v53_v51 = vmul.f32 %v50_v19, %v40_v9 }
  0x80   :  { %v59_v29 = vadd.f32 %v58_v26, %v51_v24  ;;  %v61_v60 = vadd.f32 %v58_v26, %v53_v51  ;;  %v661_v24 = vld [vmem:[%s895_s2] sm:$0xff]  }
  0x81   :  { %v45_v12 = vpop.permute.xlu1 %44  ;;  %v35_v13 = vpop.permute.xlu0 %34 }
  0x82   :  { %v54_v35 = vmul.f32 %v50_v19, %v45_v12  ;;  %v52_v36 = vmul.f32 %v50_v19, %v35_v13  ;;  %v658_v19 = vld [vmem:[%s895_s2 + $0x18] sm:$0xff]  }
  0x84   :  { %v62_v43 = vadd.f32 %v58_v26, %v54_v35  ;;  %v60_v44 = vadd.f32 %v58_v26, %v52_v36 }
  0x86   :  { %v69_v16 = vpop.permute.xlu1 %68  ;;  %v65_v17 = vpop.permute.xlu0 %64 }
  0x87   :  { %v83_v30 = vmul.f32 %v82_v25, %v65_v17  ;;  %v84_v45 = vmul.f32 %v82_v25, %v69_v16  ;;  %v656_v16 = vld [vmem:[%s895_s2 + $0x28] sm:$0xff]   ;;  %v657_v17 = vld [vmem:[%s895_s2 + $0x20] sm:$0xff]  }
  0x88   :  { %606 = vmatprep.subr.bf16.mxu0 %v656_v16 }
  0x89   :  { %v87_v37 = vadd.f32 %v83_v30, %v59_v29  ;;  %v88_v56 = vadd.f32 %v84_v45, %v60_v44  ;;  %607 = vmatpush3.bf16.msra.mxu0 %v656_v16 }
  0x8a   :  { %v73_v22 = vpop.permute.xlu1 %72  ;;  %v77_v23 = vpop.permute.xlu0 %76  ;;  %608 = vmatprep.subr.bf16.mxu0 %v657_v17 }
  0x8b   :  { %v86_v39 = vmul.f32 %v82_v25, %v77_v23  ;;  %v85_v57 = vmul.f32 %v82_v25, %v73_v22  ;;  %v659_v22 = vld [vmem:[%s895_s2 + $0x10] sm:$0xff]   ;;  %v660_v23 = vld [vmem:[%s895_s2 + $0x8] sm:$0xff]  }
  0x8d   :  { %v90_v48 = vadd.f32 %v86_v39, %v62_v43  ;;  %v89_v1 = vadd.f32 %v85_v57, %v61_v60  ;;  %609 = vmatpush3.bf16.msra.mxu0 %v657_v17 }
  0x8e   :  { %610 = vmatprep.subr.bf16.mxu0 %v658_v19 }
  0x8f   :  { %v93_v31 = vpop.permute.xlu1 %92  ;;  %v97_v32 = vpop.permute.xlu0 %96 }
  0x90   :  { %v111_v33 = vmul.f32 %v110_v27, %v93_v31  ;;  %v112_v52 = vmul.f32 %v110_v27, %v97_v32 }
  0x91   :  { %611 = vmatpush3.bf16.msra.mxu0 %v658_v19 }
  0x92   :  { %v115_v41 = vadd.f32 %v111_v33, %v87_v37  ;;  %v116_v61 = vadd.f32 %v112_v52, %v88_v56  ;;  %612 = vmatprep.subr.bf16.mxu0 %v659_v22 }
  0x93   :  { %v101_v38 = vpop.permute.xlu1 %100 }
  0x94   :  { %v121_v40 = vpop.permute.xlu0 %120  ;;  %v113_v62 = vmul.f32 %v110_v27, %v101_v38 }
  0x95   :  { %v139_v42 = vmul.f32 %v138_v34, %v121_v40  ;;  %613 = vmatpush3.bf16.msra.mxu0 %v659_v22 }
  0x96   :  { %v117_v4 = vadd.f32 %v113_v62, %v89_v1  ;;  %614 = vmatprep.subr.bf16.mxu0 %v660_v23 }
  0x97   :  { %v143_v46 = vadd.f32 %v139_v42, %v115_v41  ;;  %v105_v47 = vpop.permute.xlu1 %104 }
  0x98   :  { %v114_v49 = vmul.f32 %v110_v27, %v105_v47  ;;  %v133_v50 = vpop.permute.xlu0 %132 }
  0x99   :  { %v769_v53 = vmax.f32 %v143_v46, 0.0  ;;  %v142_v54 = vmul.f32 %v138_v34, %v133_v50  ;;  %615 = vmatpush3.bf16.msra.mxu0 %v660_v23 }
  0x9a   :  { %v118_v55 = vadd.f32 %v114_v49, %v90_v48  ;;  %616 = vmatprep.subr.bf16.mxu0 %v661_v24 }
  0x9b   :  { %151 = vadd.xlane.f32.xlu1 %v769_v53  ;;  %v159_v12 = vmul.f32 %v769_v53, %v769_v53 }
  0x9c   :  { %v146_v58 = vadd.f32 %v142_v54, %v118_v55  ;;  %v125_v59 = vpop.permute.xlu1 %124 }
  0x9d   :  { %v140_v63 = vmul.f32 %v138_v34, %v125_v59  ;;  %617 = vmatpush3.bf16.msra.mxu0 %v661_v24 }
  0x9e   :  { %v772_v0 = vmax.f32 %v146_v58, 0.0  ;;  %v206_v58 = vrot.slane %v759_v21, %v81_v18 }
  0x9f   :  { %v144_v2 = vadd.f32 %v140_v63, %v116_v61 }
  0xa0   :  { %v129_v3 = vpop.permute.xlu1 %128  ;;  %157 = vadd.xlane.f32.xlu1 %v772_v0  ;;  %v162_v10 = vmul.f32 %v772_v0, %v772_v0 }
  0xa1   :  { %v775_v5 = vmax.f32 %v144_v2, 0.0  ;;  %v141_v6 = vmul.f32 %v138_v34, %v129_v3  ;;  %v214_v2 = vrot.slane %v759_v21, %v109_v20  ;;  %v240_v20 = vrot.slane %v759_v21, %v137_v28 }
  0xa3   :  { %v145_v7 = vadd.f32 %v141_v6, %v117_v4  ;;  %153 = vadd.xlane.f32.xlu0 %v775_v5  ;;  %v160_v8 = vmul.f32 %v775_v5, %v775_v5 }
  0xa5   :  { %v780_v9 = vmax.f32 %v145_v7, 0.0  ;;  %165 = vadd.xlane.f32.xlu1 %v160_v8 }
  0xa7   :  { %155 = vadd.xlane.f32.xlu0 %v780_v9  ;;  %v161_v13 = vmul.f32 %v780_v9, %v780_v9 }
  0xa9   :  { %169 = vadd.xlane.f32.xlu1 %v162_v10 }
  0xab   :  { %163 = vadd.xlane.f32.xlu0 %v159_v12 }
  0xaf   :  { %167 = vadd.xlane.f32.xlu0 %v161_v13 }
 0x124   :  { %v152_v25 = vpop.xlane.xlu1 %151 }
 0x125   :  { %v171_v34 = vmul.f32 0.0078125, %v152_v25 }
 0x127   :  { %v179_v41 = vmul.f32 %v171_v34, %v171_v34  ;;  %v187_v60 = vsub.f32 %v769_v53, %v171_v34  ;;  %v663_v34 = vld [vmem:[%s896_s3 + $0x30] sm:$0xff]  }
 0x129   :  { %v158_v26 = vpop.xlane.xlu1 %157 }
 0x12a   :  { %v174_v31 = vmul.f32 0.0078125, %v158_v26 }
 0x12c   :  { %v154_v27 = vpop.xlane.xlu0 %153  ;;  %v182_v38 = vmul.f32 %v174_v31, %v174_v31  ;;  %v190_v61 = vsub.f32 %v772_v0, %v174_v31 }
 0x12d   :  { %v172_v29 = vmul.f32 0.0078125, %v154_v27 }
 0x12e   :  { %v166_v30 = vpop.xlane.xlu1 %165 }
 0x12f   :  { %v180_v32 = vmul.f32 %v172_v29, %v172_v29  ;;  %v176_v33 = vmul.f32 0.0078125, %v166_v30  ;;  %v188_v56 = vsub.f32 %v775_v5, %v172_v29 }
 0x130   :  { %v156_v35 = vpop.xlane.xlu0 %155 }
 0x131   :  { %v184_v36 = vsub.f32 %v176_v33, %v180_v32  ;;  %v173_v43 = vmul.f32 0.0078125, %v156_v35  ;;  %v662_v33 = vld [vmem:[%s896_s3 + $0x38] sm:$0xff]   ;;  %v664_v35 = vld [vmem:[%s896_s3 + $0x28] sm:$0xff]  }
 0x132   :  { %v170_v37 = vpop.xlane.xlu1 %169  ;;  %622 = vmatprep.subr.bf16.mxu1 %v662_v33 }
 0x133   :  { %v192_v39 = vadd.f32 1e-05, %v184_v36  ;;  %v178_v40 = vmul.f32 0.0078125, %v170_v37  ;;  %v181_v49 = vmul.f32 %v173_v43, %v173_v43  ;;  %v189_v4 = vsub.f32 %v780_v9, %v173_v43  ;;  %623 = vmatpush3.bf16.msra.mxu1 %v662_v33  ;;  %v665_v36 = vld [vmem:[%s896_s3 + $0x20] sm:$0xff]   ;;  %v666_v37 = vld [vmem:[%s896_s3 + $0x18] sm:$0xff]  }
 0x134   :  { %v164_v42 = vpop.xlane.xlu0 %163  ;;  %624 = vmatprep.subr.bf16.mxu1 %v663_v34 }
 0x135   :  { %670 = vrsqrt.f32 %v192_v39  ;;  %v186_v44 = vsub.f32 %v178_v40, %v182_v38  ;;  %v175_v45 = vmul.f32 0.0078125, %v164_v42  ;;  %v667_v38 = vld [vmem:[%s896_s3 + $0x10] sm:$0xff]   ;;  %v668_v39 = vld [vmem:[%s896_s3 + $0x8] sm:$0xff]   ;;  %v669_v40 = vld [vmem:[%s896_s3] sm:$0xff]  }
 0x137   :  { %v194_v46 = vadd.f32 1e-05, %v186_v44  ;;  %v183_v47 = vsub.f32 %v175_v45, %v179_v41  ;;  %625 = vmatpush3.bf16.msra.mxu1 %v663_v34  ;;  %v430_v34 = vsub.s32 6, %v748_v11 }
 0x138   :  { %v168_v48 = vpop.xlane.xlu0 %167  ;;  %626 = vmatprep.subr.bf16.mxu1 %v664_v35 }
 0x139   :  { %672 = vrsqrt.f32 %v194_v46  ;;  %v191_v50 = vadd.f32 1e-05, %v183_v47  ;;  %v177_v51 = vmul.f32 0.0078125, %v168_v48 }
 0x13b   :  { %674 = vrsqrt.f32 %v191_v50  ;;  %v185_v52 = vsub.f32 %v177_v51, %v181_v49  ;;  %627 = vmatpush3.bf16.msra.mxu1 %v664_v35  ;;  %v431_v35 = vrot.slane %v759_v21, %v430_v34 }
 0x13c   :  { %628 = vmatprep.subr.bf16.mxu1 %v665_v36 }
 0x13d   :  { %v193_v54 = vadd.f32 1e-05, %v185_v52 }
 0x13f   :  { %676 = vrsqrt.f32 %v193_v54  ;;  %629 = vmatpush3.bf16.msra.mxu1 %v665_v36 }
 0x140   :  { %630 = vmatprep.subr.bf16.mxu1 %v666_v37 }
 0x142   :  { %v671_v55 = vpop.eup %670 }
 0x143   :  { %v200_v57 = vmul.f32 %v671_v55, %v188_v56  ;;  %631 = vmatpush3.bf16.msra.mxu1 %v666_v37 }
 0x144   :  { %632 = vmatprep.subr.bf16.mxu1 %v667_v38 }
 0x145   :  { %v208_v1 = vmul.f32 %v206_v58, %v200_v57 }
 0x146   :  { %v673_v59 = vpop.eup %672 }
 0x147   :  { %v202_v3 = vmul.f32 %v673_v59, %v190_v61  ;;  %v216_v8 = vadd.f32 %v214_v2, %v208_v1  ;;  %633 = vmatpush3.bf16.msra.mxu1 %v667_v38 }
 0x148   :  { %v675_v62 = vpop.eup %674  ;;  %634 = vmatprep.subr.bf16.mxu1 %v668_v39 }
 0x149   :  { %v199_v63 = vmul.f32 %v675_v62, %v187_v60  ;;  %v210_v10 = vmul.f32 %v206_v58, %v202_v3 }
 0x14b   :  { %v207_v5 = vmul.f32 %v206_v58, %v199_v63  ;;  %v218_v13 = vadd.f32 %v214_v2, %v210_v10  ;;  %635 = vmatpush3.bf16.msra.mxu1 %v668_v39 }
 0x14c   :  { %v677_v6 = vpop.eup %676  ;;  %636 = vmatprep.subr.bf16.mxu1 %v669_v40 }
 0x14d   :  { %v215_v7 = vadd.f32 %v214_v2, %v207_v5  ;;  %v201_v18 = vmul.f32 %v677_v6, %v189_v4 }
 0x14f   :  { %v219_v12 = vpack.c.bf16 %v216_v8, %v215_v7  ;;  %v209_v53 = vmul.f32 %v206_v58, %v201_v18  ;;  %637 = vmatpush3.bf16.msra.mxu1 %v669_v40  ;;  %v396_v7 = vsub.s32 4, %v748_v11 }
 0x151   :  { %618 = vmatprep.mubr.bf16.mxu0 %v219_v12  ;;  %v217_v0 = vadd.f32 %v214_v2, %v209_v53  ;;  %v397_v12 = vrot.slane %v759_v21, %v396_v7  ;;  %v404_v53 = vsub.s32 5, %v748_v11 }
 0x153   :  { %v220_v14 = vpack.c.bf16 %v218_v13, %v217_v0 }
 0x155   :  { %619 = vmatmul.mubr.bf16.vlgmr.msra.gmra.mxu0 %v220_v14 }
 0x215   :  { %v620_v15 = vpop.f32.mrf.mxu0 }
 0x216   :  { %v332_v16 = vadd.f32 %v620_v15, %v240_v20 }
 0x217   :  { %v323_v9 = vpop.f32.mrf.mxu0 }
 0x218   :  { %v826_v17 = vmax.f32 %v332_v16, 0.0  ;;  %v324_v19 = vadd.f32 %v323_v9, %v240_v20  ;;  %v405_v9 = vrot.slane %v759_v21, %v404_v53 }
 0x219   :  { %v621_v22 = vpop.f32.mrf.mxu0 }
 0x21a   :  { %v335_v23 = vadd.f32 %v621_v22, %v240_v20  ;;  %346 = vadd.xlane.f32.xlu0 %v826_v17  ;;  %v829_v25 = vmax.f32 %v324_v19, 0.0  ;;  %v352_v31 = vmul.f32 %v826_v17, %v826_v17 }
 0x21b   :  { %v326_v24 = vpop.f32.mrf.mxu0 }
 0x21c   :  { %v831_v26 = vmax.f32 %v335_v23, 0.0  ;;  %v327_v27 = vadd.f32 %v326_v24, %v240_v20  ;;  %v350_v29 = vmul.f32 %v829_v25, %v829_v25 }
 0x21e   :  { %348 = vadd.xlane.f32.xlu1 %v831_v26  ;;  %342 = vadd.xlane.f32.xlu0 %v829_v25  ;;  %v835_v28 = vmax.f32 %v327_v27, 0.0  ;;  %v353_v32 = vmul.f32 %v831_v26, %v831_v26 }
 0x220   :  { %v351_v30 = vmul.f32 %v835_v28, %v835_v28 }
 0x222   :  { %344 = vadd.xlane.f32.xlu1 %v835_v28  ;;  %354 = vadd.xlane.f32.xlu0 %v350_v29 }
 0x226   :  { %356 = vadd.xlane.f32.xlu1 %v351_v30  ;;  %358 = vadd.xlane.f32.xlu0 %v352_v31 }
 0x22a   :  { %360 = vadd.xlane.f32.xlu1 %v353_v32 }
 0x2a3   :  { %v347_v41 = vpop.xlane.xlu0 %346 }
 0x2a4   :  { %v364_v45 = vmul.f32 0.0078125, %v347_v41 }
 0x2a6   :  { %v372_v52 = vmul.f32 %v364_v45, %v364_v45  ;;  %v380_v14 = vsub.f32 %v826_v17, %v364_v45 }
 0x2a7   :  { %v349_v42 = vpop.xlane.xlu1 %348  ;;  %v343_v43 = vpop.xlane.xlu0 %342 }
 0x2a8   :  { %v362_v44 = vmul.f32 0.0078125, %v343_v43  ;;  %v365_v54 = vmul.f32 0.0078125, %v349_v42 }
 0x2aa   :  { %v370_v48 = vmul.f32 %v362_v44, %v362_v44  ;;  %v373_v1 = vmul.f32 %v365_v54, %v365_v54  ;;  %v378_v8 = vsub.f32 %v829_v25, %v362_v44  ;;  %v381_v22 = vsub.f32 %v831_v26, %v365_v54 }
 0x2ab   :  { %v345_v46 = vpop.xlane.xlu1 %344  ;;  %v355_v47 = vpop.xlane.xlu0 %354 }
 0x2ac   :  { %v363_v49 = vmul.f32 0.0078125, %v345_v46  ;;  %v366_v50 = vmul.f32 0.0078125, %v355_v47 }
 0x2ae   :  { %v374_v51 = vsub.f32 %v366_v50, %v370_v48  ;;  %v371_v57 = vmul.f32 %v363_v49, %v363_v49  ;;  %v379_v0 = vsub.f32 %v835_v28, %v363_v49 }
 0x2af   :  { %v357_v55 = vpop.xlane.xlu1 %356  ;;  %v359_v56 = vpop.xlane.xlu0 %358 }
 0x2b0   :  { %v382_v58 = vadd.f32 1e-05, %v374_v51  ;;  %v367_v59 = vmul.f32 0.0078125, %v357_v55  ;;  %v368_v60 = vmul.f32 0.0078125, %v359_v56 }
 0x2b2   :  { %678 = vrsqrt.f32 %v382_v58  ;;  %v375_v61 = vsub.f32 %v367_v59, %v371_v57  ;;  %v376_v62 = vsub.f32 %v368_v60, %v372_v52 }
 0x2b3   :  { %v361_v63 = vpop.xlane.xlu1 %360 }
 0x2b4   :  { %v383_v2 = vadd.f32 1e-05, %v375_v61  ;;  %v384_v3 = vadd.f32 1e-05, %v376_v62  ;;  %v369_v4 = vmul.f32 0.0078125, %v361_v63 }
 0x2b6   :  { %680 = vrsqrt.f32 %v383_v2  ;;  %v377_v5 = vsub.f32 %v369_v4, %v373_v1 }
 0x2b7   :  { %682 = vrsqrt.f32 %v384_v3 }
 0x2b8   :  { %v385_v6 = vadd.f32 1e-05, %v377_v5 }
 0x2ba   :  { %684 = vrsqrt.f32 %v385_v6 }
 0x2bf   :  { %v679_v18 = vpop.eup %678 }
 0x2c0   :  { %v390_v10 = vmul.f32 %v679_v18, %v378_v8 }
 0x2c2   :  { %v398_v16 = vmul.f32 %v397_v12, %v390_v10 }
 0x2c3   :  { %v681_v13 = vpop.eup %680 }
 0x2c4   :  { %v683_v20 = vpop.eup %682  ;;  %v391_v15 = vmul.f32 %v681_v13, %v379_v0  ;;  %v406_v25 = vadd.f32 %v405_v9, %v398_v16 }
 0x2c5   :  { %v392_v19 = vmul.f32 %v683_v20, %v380_v14 }
 0x2c6   :  { %v399_v23 = vmul.f32 %v397_v12, %v391_v15 }
 0x2c7   :  { %v685_v24 = vpop.eup %684  ;;  %v400_v30 = vmul.f32 %v397_v12, %v392_v19 }
 0x2c8   :  { %v407_v27 = vadd.f32 %v405_v9, %v399_v23  ;;  %v393_v29 = vmul.f32 %v685_v24, %v381_v22 }
 0x2c9   :  { %v408_v28 = vadd.f32 %v405_v9, %v400_v30 }
 0x2ca   :  { %v410_v31 = vpack.c.bf16 %v407_v27, %v406_v25  ;;  %v401_v32 = vmul.f32 %v397_v12, %v393_v29 }
 0x2cc   :  { %638 = vmatprep.mubr.bf16.mxu1 %v410_v31  ;;  %v409_v33 = vadd.f32 %v405_v9, %v401_v32 }
 0x2ce   :  { %v411_v17 = vpack.c.bf16 %v409_v33, %v408_v28 }
 0x2d0   :  { %639 = vmatmul.mubr.bf16.vlgmr.msra.gmra.mxu1 %v411_v17 }
 0x390   :  { %v640_v36 = vpop.f32.mrf.mxu1 }
 0x391   :  { %v523_v37 = vadd.f32 %v640_v36, %v431_v35 }
 0x392   :  { %v514_v26 = vpop.f32.mrf.mxu1 }
 0x393   :  { %v580_v38 = vmul.f32 -1.442695, %v523_v37  ;;  %v515_v39 = vadd.f32 %v514_v26, %v431_v35 }
 0x394   :  { %v641_v40 = vpop.f32.mrf.mxu1 }
 0x395   :  { %686 = vpow2.f32 %v580_v38  ;;  %v578_v41 = vmul.f32 -1.442695, %v515_v39  ;;  %v526_v42 = vadd.f32 %v641_v40, %v431_v35 }
 0x396   :  { %v517_v43 = vpop.f32.mrf.mxu1 }
 0x397   :  { %688 = vpow2.f32 %v578_v41  ;;  %v581_v44 = vmul.f32 -1.442695, %v526_v42  ;;  %v518_v45 = vadd.f32 %v517_v43, %v431_v35 }
 0x399   :  { %690 = vpow2.f32 %v581_v44  ;;  %v579_v46 = vmul.f32 -1.442695, %v518_v45 }
 0x39b   :  { %692 = vpow2.f32 %v579_v46 }
 0x3a2   :  { %v687_v47 = vpop.eup %686 }
 0x3a3   :  { %v543_v11 = vadd.f32 1.0, %v687_v47 }
 0x3a4   :  { %v689_v48 = vpop.eup %688 }
 0x3a5   :  { %694 = vrcp.f32 %v543_v11  ;;  %v541_v21 = vadd.f32 1.0, %v689_v48 }
 0x3a6   :  { %v691_v49 = vpop.eup %690 }
 0x3a7   :  { %696 = vrcp.f32 %v541_v21  ;;  %v544_v50 = vadd.f32 1.0, %v691_v49 }
 0x3a8   :  { %v693_v51 = vpop.eup %692 }
 0x3a9   :  { %698 = vrcp.f32 %v544_v50  ;;  %v542_v52 = vadd.f32 1.0, %v693_v51 }
 0x3ab   :  { %700 = vrcp.f32 %v542_v52 }
 0x3b2   :  { %v695_v54 = vpop.eup %694 }
 0x3b3   :  { %556 = vst.msk [vmem:[%s897_s5 + $0x10] sm:$0xff] %vm553_vm0, %v695_v54 }
 0x3b4   :  { %v697_v55 = vpop.eup %696 }
 0x3b5   :  { %554 = vst.msk [vmem:[%s897_s5] sm:$0xff] %vm553_vm0, %v697_v55 }
 0x3b6   :  { %v699_v56 = vpop.eup %698 }
 0x3b7   :  { %557 = vst.msk [vmem:[%s897_s5 + $0x18] sm:$0xff] %vm553_vm0, %v699_v56 }
 0x3b8   :  { %v701_v57 = vpop.eup %700 }
 0x3b9   :  { %555 = vst.msk [vmem:[%s897_s5 + $0x8] sm:$0xff] %vm553_vm0, %v701_v57 }

</bundles_post_ra>
